<compile_context>
chip_gen: v7x
topology: tpu7x:2x2x1
jax: 0.10.0
libtpu: 0.0.40
codegen_flags: <defaults>
</compile_context>

<pallas_src>
import jax
import jax.numpy as jnp
from jax.experimental import pallas as pl
from jax.experimental.pallas import tpu as pltpu


def _estimation_error_kernel(scale_ref, n_ref, mu_ref, out_ref):
    # scale_ref: (1,) f32 in SMEM (scalar prefetch) holding 1 / (2 * sigma^2).
    # Math in f32 regardless of storage dtype (v5e has no bf16 VPU/EUP); HBM
    # traffic stays in the callers' dtypes and the casts are VPU ops hidden
    # under the block DMA.
    # TODO(synk): a bf16 compute chain would halve VALU issue for bf16 I/O on
    # v6e/v7x, but f32 keeps exact parity with the reference on all generations.
    n = n_ref[...].astype(jnp.float32)
    mu = mu_ref[...].astype(jnp.float32)
    diff = n - mu
    std = diff * diff * scale_ref[0]
    # Matches the reference module exactly: epsilon = 1 - exp(-std).
    out_ref[...] = (1.0 - jnp.exp(-std)).astype(out_ref.dtype)


def _epsilon_ref(n, mu, scale, out_dtype):
    d = n.astype(jnp.float32) - mu.astype(jnp.float32)
    return (1.0 - jnp.exp(-(d * d) * scale)).astype(out_dtype)


def _sublanes(dtype):
    # native sublane tile height: 8 for 32-bit, 16 for bf16/f16, 32 for 8-bit
    return max(8, 32 // jnp.dtype(dtype).itemsize)


def estimation_error(n, mu, sigma, *, target_block_elems=1 << 19, use_pallas=None):
    """Pallas TPU implementation of EstimationError.forward(n, mu).

    epsilon = 1 - exp(-(n - mu)^2 / (2 * sigma^2)), elementwise.
    Output dtype follows the (floating) promoted input dtype; ints compute in f32.
    """
    assert n.shape == mu.shape, "broadcasting beyond equal shapes not needed here"
    orig_shape = n.shape

    out_dtype = jnp.result_type(n.dtype, mu.dtype)
    if not jnp.issubdtype(out_dtype, jnp.floating):
        out_dtype = jnp.float32

    s = jnp.asarray(sigma, jnp.float32)
    scale = 1.0 / (2.0 * s * s)          # f32 scalar; traced-sigma friendly

    total = n.size
    if total == 0:
        return jnp.zeros(orig_shape, out_dtype)

    item_n = jnp.dtype(n.dtype).itemsize
    item_mu = jnp.dtype(mu.dtype).itemsize
    item_out = jnp.dtype(out_dtype).itemsize
    max_item = max(item_n, item_mu, item_out)

    # tiny tensors: custom-call/grid overhead dominates and Pallas blocks fusion
    if use_pallas is None:
        use_pallas = total * max_item >= (2 << 20)

    # dtype-aware native tiling (sub-32-bit dtypes pack along sublanes)
    sub = max(_sublanes(n.dtype), _sublanes(mu.dtype), _sublanes(out_dtype))
    align = sub * 128

    # 128-lane-aligned prefix goes through the kernel; the <128-elem tail via jnp
    main = total - (total % 128)
    if (not use_pallas) or main < align:
        return _epsilon_ref(n, mu, scale, out_dtype).reshape(orig_shape)

    n_flat = n.reshape(-1)
    mu_flat = mu.reshape(-1)
    tail = total - main

    # widest lane count that divides the prefix and still leaves >= sub rows
    lanes = 128
    for cand in (4096, 2048, 1024, 512, 256, 128):
        if main % cand == 0 and main // cand >= sub:
            lanes = cand
            break
    rows = main // lanes

    # ---- block sizing ----
    # target >= 8 grid steps (>= 4 per TC on v7x) while keeping blocks >= ~1 MiB;
    # prefer an even step count so the megacore split is balanced.
    min_block_elems = max(1, (1 << 20) // max_item)          # ~1 MiB per array
    target_tr = max(sub, (target_block_elems // lanes) // sub * sub)
    min_tr = max(sub, (min_block_elems // lanes) // sub * sub)

    steps = pl.cdiv(rows, target_tr)                         # respect max block
    steps = max(steps, min(8, max(1, rows // min_tr)))       # push toward >= 8
    if steps > 1 and steps % 2:
        steps += 1                                           # even for 2-TC split
    steps = min(steps, pl.cdiv(rows, sub))

    tr = max(sub, pl.cdiv(rows, steps))
    tr = ((tr + sub - 1) // sub) * sub                       # sublane multiple
    if tr >= rows:
        tr = rows                                            # one full block (exempt)
    grid_steps = pl.cdiv(rows, tr)
    if grid_steps > 1 and grid_steps % 2 and tr > sub:
        tr -= sub                                            # retry an even split
        grid_steps = pl.cdiv(rows, tr)

    if tail:                                                 # rare misaligned path
        n_main, mu_main = n_flat[:main], mu_flat[:main]
    else:                                                    # common path: zero copies
        n_main, mu_main = n_flat, mu_flat
    n2d = n_main.reshape(rows, lanes)
    mu2d = mu_main.reshape(rows, lanes)

    # VMEM = 2x double-buffered blocks of (n, mu, out) + headroom; safe on v7x 64 MiB
    block_bytes = tr * lanes * (item_n + item_mu + item_out)
    vmem_limit = min(48 << 20, int(2 * block_bytes * 1.25) + (12 << 20))

    cost = pl.CostEstimate(
        flops=4 * main,
        transcendentals=main,
        bytes_accessed=main * (item_n + item_mu + item_out),
    )

    out2d = pl.pallas_call(
        _estimation_error_kernel,
        out_shape=jax.ShapeDtypeStruct((rows, lanes), out_dtype),
        grid_spec=pltpu.PrefetchScalarGridSpec(
            num_scalar_prefetch=1,
            grid=(grid_steps,),
            in_specs=[
                pl.BlockSpec((tr, lanes), lambda i, scale_ref: (i, 0)),
                pl.BlockSpec((tr, lanes), lambda i, scale_ref: (i, 0)),
            ],
            out_specs=pl.BlockSpec((tr, lanes), lambda i, scale_ref: (i, 0)),
        ),
        compiler_params=pltpu.CompilerParams(
            dimension_semantics=("parallel",),
            vmem_limit_bytes=vmem_limit,
        ),
        cost_estimate=cost,
    )(scale.reshape(1), n2d, mu2d)

    out_flat = out2d.reshape(-1)
    if tail:
        tail_out = _epsilon_ref(n_flat[main:], mu_flat[main:], scale, out_dtype)
        out_flat = jnp.concatenate([out_flat, tail_out])
    return out_flat.reshape(orig_shape)


if __name__ == "__main__":
    key = jax.random.PRNGKey(0)
    k1, k2 = jax.random.split(key)
    sigma = 2.0

    def ref_fn(a, b):
        d = a.astype(jnp.float32) - b.astype(jnp.float32)
        return 1.0 - jnp.exp(-jnp.square(d) / (2.0 * sigma ** 2))

    # small spec-consistent shape (B=2, C=4, H=W=16), forced through the Pallas path
    shape = (2, 4, 16, 16)
    n = jax.random.normal(k1, shape, dtype=jnp.float32) * 10.0 + 50.0
    mu = jax.random.normal(k2, shape, dtype=jnp.float32) * 10.0 + 50.0
    out = jax.block_until_ready(estimation_error(n, mu, sigma, use_pallas=True))
    assert out.shape == shape and out.dtype == jnp.float32
    assert jnp.allclose(out, ref_fn(n, mu), atol=1e-6, rtol=1e-6), "f32 mismatch"

    # larger shape exercising multi-step grid / auto block sizing
    shape_l = (8, 16, 64, 128)
    nl = jax.random.normal(k1, shape_l, dtype=jnp.float32)
    ml = jax.random.normal(k2, shape_l, dtype=jnp.float32)
    out_l = jax.block_until_ready(estimation_error(nl, ml, sigma))
    assert jnp.allclose(out_l, ref_fn(nl, ml), atol=1e-6, rtol=1e-6), "large mismatch"

    # non-128-aligned size exercises the aligned-prefix + jnp-tail path
    shape_m = (3, 5, 7, 11)
    nm = jax.random.normal(k1, shape_m, dtype=jnp.float32)
    mm = jax.random.normal(k2, shape_m, dtype=jnp.float32)
    out_m = jax.block_until_ready(estimation_error(nm, mm, sigma, use_pallas=True))
    assert jnp.allclose(out_m, ref_fn(nm, mm), atol=1e-6, rtol=1e-6), "tail mismatch"

    # bf16 storage: HBM traffic stays bf16, math is f32 in-kernel
    nb = n.astype(jnp.bfloat16)
    mb = mu.astype(jnp.bfloat16)
    out_b = jax.block_until_ready(estimation_error(nb, mb, sigma, use_pallas=True))
    assert out_b.dtype == jnp.bfloat16
    ref_b = ref_fn(nb, mb).astype(jnp.bfloat16)
    assert jnp.allclose(out_b.astype(jnp.float32), ref_b.astype(jnp.float32),
                        atol=1e-2, rtol=1e-2), "bf16 mismatch"

    # mixed dtypes stay in their native HBM dtypes (no wrapper-side upcast)
    out_mix = jax.block_until_ready(estimation_error(nb, mu, sigma, use_pallas=True))
    assert out_mix.dtype == jnp.float32
    assert jnp.allclose(out_mix, ref_fn(nb, mu), atol=1e-2, rtol=1e-2), "mixed mismatch"

    # tiny tensors take the pure-jnp fast path by default
    out_small = jax.block_until_ready(estimation_error(n, mu, sigma))
    assert jnp.allclose(out_small, ref_fn(n, mu), atol=1e-6, rtol=1e-6), "fallback mismatch"

    print("KERNEL_OK")
</pallas_src>

<mosaic_0001>
module attributes {stable_mosaic.version = 11 : i64} {
  func.func @_estimation_error_kernel(%arg0: i32, %arg1: memref<1xf32, #tpu.memory_space<smem>>, %arg2: memref<8x256xf32, #tpu.memory_space<vmem>>, %arg3: memref<8x256xf32, #tpu.memory_space<vmem>>, %arg4: memref<8x256xf32, #tpu.memory_space<vmem>>) attributes {dimension_semantics = [#tpu.dimension_semantics<parallel>], iteration_bounds = array<i64: 1>, scalar_prefetch = 1 : i64, scratch_operands = 0 : i64, tpu.core_type = #tpu.core_type<tc>, window_params = [{transform_indices = @transform_0, window_bounds = array<i64: 8, 256>}, {transform_indices = @transform_1, window_bounds = array<i64: 8, 256>}, {transform_indices = @transform_2, window_bounds = array<i64: 8, 256>}]} {
    %c0 = arith.constant 0 : index
    %c0_0 = arith.constant 0 : index
    %0 = vector.load %arg2[%c0, %c0_0] : memref<8x256xf32, #tpu.memory_space<vmem>>, vector<8x256xf32>
    %c0_1 = arith.constant 0 : index
    %c0_2 = arith.constant 0 : index
    %1 = vector.load %arg3[%c0_1, %c0_2] : memref<8x256xf32, #tpu.memory_space<vmem>>, vector<8x256xf32>
    %2 = arith.subf %0, %1 : vector<8x256xf32>
    %3 = arith.mulf %2, %2 : vector<8x256xf32>
    %c0_3 = arith.constant 0 : index
    %4 = memref.load %arg1[%c0_3] : memref<1xf32, #tpu.memory_space<smem>>
    %5 = vector.broadcast %4 : f32 to vector<8x256xf32>
    %6 = arith.mulf %3, %5 : vector<8x256xf32>
    %cst = arith.constant 0.000000e+00 : f32
    %7 = vector.broadcast %cst : f32 to vector<8x256xf32>
    %8 = arith.subf %7, %6 : vector<8x256xf32>
    %9 = math.exp %8 : vector<8x256xf32>
    %cst_4 = arith.constant 1.000000e+00 : f32
    %10 = vector.broadcast %cst_4 : f32 to vector<8x256xf32>
    %11 = arith.subf %10, %9 : vector<8x256xf32>
    %c0_5 = arith.constant 0 : index
    %c0_6 = arith.constant 0 : index
    %12 = vector.load %arg4[%c0_5, %c0_6] : memref<8x256xf32, #tpu.memory_space<vmem>>, vector<8x256xf32>
    tpu.vector_store %arg4[%c0_5, %c0_6], %11 {strides = array<i32>} : memref<8x256xf32, #tpu.memory_space<vmem>>, vector<8x256xf32>,
    return
  }
  func.func @transform_0(%arg0: i32, %arg1: memref<1xf32, #tpu.memory_space<smem>>) -> (i32, i32) {
    %c0_i32 = arith.constant 0 : i32
    %c0_i32_0 = arith.constant 0 : i32
    return %arg0, %c0_i32 : i32, i32
  }
  func.func @transform_1(%arg0: i32, %arg1: memref<1xf32, #tpu.memory_space<smem>>) -> (i32, i32) {
    %c0_i32 = arith.constant 0 : i32
    %c0_i32_0 = arith.constant 0 : i32
    return %arg0, %c0_i32 : i32, i32
  }
  func.func @transform_2(%arg0: i32, %arg1: memref<1xf32, #tpu.memory_space<smem>>) -> (i32, i32) {
    %c0_i32 = arith.constant 0 : i32
    %c0_i32_0 = arith.constant 0 : i32
    return %arg0, %c0_i32 : i32, i32
  }
}

</mosaic_0001>

<bundles_post_ra>
// kernel: tpu_custom_call.1
= control target key start
LH: loop header
LB: loop body
LE: loop exit
PB: predicated region body
PF: predicated region fallthrough
CT: control target
= control target key end

     0   :  { %9 = vsyncpa [#allocation5], 0  ;;  %s217_s0 = inlined_call_operand.<no memory space> [shape: f32[1], index: 0, kind: input, shape index: {}]   ;;  %s218_s1 = inlined_call_operand.hbm [shape: f32[8,256], index: 1, kind: input, shape index: {}]   ;;  %s219_s2 = inlined_call_operand.hbm [shape: f32[8,256], index: 2, kind: input, shape index: {}]   ;;  %s220_s3 = inlined_call_operand.hbm [shape: f32[8,256], index: 3, kind: output, shape index: {}]  }
   0x1   :  { %10 = vsyncpa [#allocation8], 0 }
   0x2   :  { %11 = vsyncpa [#allocation6], 0  ;;  %s155_s12 = smov [#allocation4]   ;;  %s156_s14 = smov [#allocation7]  }
   0x3   :  { %s18_s13 = sshll.u32 %s155_s12, 4  ;;  %s28_s15 = sshll.u32 %s156_s14, 4  ;;  %s19_s13 = int_to_ptr.vmem [resolvable:$true] %s18_s13  ;;  %s29_s15 = int_to_ptr.vmem [resolvable:$true] %s28_s15 }
   0x4   :  { %s83_s18 = scalar_lea.hbm %s218_s1, 256 }
   0x5   :  { %p84_p0 = scmp.ne.s32.totalorder %s218_s1, %s83_s18  ;;  %p87_p1 = scmp.lt.u32.totalorder %s83_s18, %s218_s1 }
   0x7   :  { %p89_p2 = pnand %p87_p1, %p84_p0 }
   0x9   :  { %92 = shalt.err (!%p89_p2)
}
   0xa   :  { %s93_s23 = scalar_lea.vmem %s19_s13, 256  ;;  %p98_p4 = scmp.lt.s32.totalorder %s19_s13, %s19_s13 }
   0xb   :  { %p94_p3 = scmp.ne.s32.totalorder %s19_s13, %s93_s23  ;;  %p99_p5 = scmp.lt.s32.totalorder %s93_s23, %s93_s23 }
   0xd   :  { %p100_p6 = por %p99_p5, %p98_p4 }
   0xf   :  { %p101_p7 = pnand %p100_p6, %p94_p3 }
  0x11   :  { %104 = shalt.err (!%p101_p7)
}
  0x12   :  { %21 = dma.hbm_to_vmem [thread:$0]  %s218_s1, 256, %s19_s13, [#allocation5]  }
  0x13   :  { %s105_s28 = scalar_lea.hbm %s219_s2, 256 }
  0x14   :  { %p106_p8 = scmp.ne.s32.totalorder %s219_s2, %s105_s28  ;;  %p109_p9 = scmp.lt.u32.totalorder %s105_s28, %s219_s2 }
  0x16   :  { %p111_p10 = pnand %p109_p9, %p106_p8 }
  0x18   :  { %114 = shalt.err (!%p111_p10)
}
  0x19   :  { %s115_s6 = scalar_lea.vmem %s29_s15, 256  ;;  %p120_p12 = scmp.lt.s32.totalorder %s29_s15, %s29_s15 }
  0x1a   :  { %p116_p11 = scmp.ne.s32.totalorder %s29_s15, %s115_s6  ;;  %p121_p13 = scmp.lt.s32.totalorder %s115_s6, %s115_s6 }
  0x1c   :  { %p122_p0 = por %p121_p13, %p120_p12 }
  0x1e   :  { %p123_p1 = pnand %p122_p0, %p116_p11 }
  0x20   :  { %126 = shalt.err (!%p123_p1)
}
  0x21   :  { %31 = dma.hbm_to_vmem [thread:$0]  %s219_s2, 256, %s29_s15, [#allocation8]  }
  0x22   :  { %149 = dma.done.wait [#allocation5], 256  }
  0x23   :  { %150 = vsyncadd [#allocation5], 4294967040 }
  0x24   :  { %151 = dma.done.wait [#allocation8], 256  }
  0x25   :  { %152 = vsyncadd [#allocation8], 4294967040  ;;  %v38_v0 = vld [vmem:[#allocation4] sm:$0xff]  ;;  %v40_v1 = vld [vmem:[#allocation7] sm:$0xff]  ;;  %v47_v5 = vstv %s217_s0  ;;  %s157_s2 = smov [#allocation9]  }
  0x26   :  { %v39_v2 = vld [vmem:[#allocation4 + $0x8] sm:$0xff]  ;;  %v42_v3 = vsub.f32 %v38_v0, %v40_v1  ;;  %v41_v4 = vld [vmem:[#allocation7 + $0x8] sm:$0xff]  ;;  %s66_s10 = sshll.u32 %s157_s2, 4  ;;  %s67_s10 = int_to_ptr.vmem [resolvable:$true] %s66_s10 }
  0x27   :  { %v43_v6 = vsub.f32 %v39_v2, %v41_v4  ;;  %s127_s0 = scalar_lea.vmem %s67_s10, 256  ;;  %p132_p3 = scmp.lt.s32.totalorder %s67_s10, %s67_s10 }
  0x28   :  { %v44_v7 = vmul.f32 %v42_v3, %v42_v3  ;;  %p128_p2 = scmp.ne.s32.totalorder %s67_s10, %s127_s0  ;;  %p133_p4 = scmp.lt.s32.totalorder %s127_s0, %s127_s0 }
  0x29   :  { %v45_v8 = vmul.f32 %v43_v6, %v43_v6 }
  0x2a   :  { %v48_v9 = vmul.f32 %v47_v5, %v44_v7  ;;  %p134_p5 = por %p133_p4, %p132_p3 }
  0x2b   :  { %v49_v10 = vmul.f32 %v47_v5, %v45_v8 }
  0x2c   :  { %v50_v11 = vsub.f32 0.0, %v48_v9  ;;  %p135_p6 = pnand %p134_p5, %p128_p2 }
  0x2d   :  { %v51_v12 = vsub.f32 0.0, %v49_v10 }
  0x2e   :  { %v52_v13 = vmul.f32 1.442695, %v50_v11 }
  0x2f   :  { %v54_v14 = vmul.f32 1.442695, %v51_v12 }
  0x30   :  { %79 = vpow2.f32 %v52_v13 }
  0x31   :  { %81 = vpow2.f32 %v54_v14 }
  0x3a   :  { %v80_v15 = vpop.eup %79 }
  0x3b   :  { %v82_v16 = vpop.eup %81  ;;  %v56_v17 = vsub.f32 1.0, %v80_v15 }
  0x3c   :  { %v57_v18 = vsub.f32 1.0, %v82_v16 }
  0x3d   :  { %58 = vst [vmem:[#allocation9] sm:$0xff] %v56_v17 }
  0x3e   :  { %59 = vst [vmem:[#allocation9 + $0x8] sm:$0xff] %v57_v18 }
  0x3f   :  { %138 = shalt.err (!%p135_p6)
}
  0x40   :  { %s139_s13 = scalar_lea.hbm %s220_s3, 256 }
  0x41   :  { %p140_p7 = scmp.ne.s32.totalorder %s220_s3, %s139_s13  ;;  %p143_p8 = scmp.lt.u32.totalorder %s139_s13, %s220_s3 }
  0x43   :  { %p145_p9 = pnand %p143_p8, %p140_p7 }
  0x45   :  { %148 = shalt.err (!%p145_p9)
}
  0x46   :  { %69 = dma.vmem_to_hbm [thread:$0]  %s67_s10, 256, %s220_s3, [#allocation6]  }
  0x47   :  { %153 = dma.done.wait [#allocation6], 256  }
  0x48   :  { %154 = vsyncadd [#allocation6], 4294967040 }
  0x49   :  { %73 = vsyncpa [#allocation5], 1 }
  0x4a   :  { %74 = vsyncpa [#allocation8], 1 }
  0x4b   :  { %75 = vsyncpa [#allocation6], 1 }

</bundles_post_ra>
